<compile_context>
chip_gen: v5e
topology: v5e:2x2
jax: 0.10.0
libtpu: 0.0.40
codegen_flags: <defaults>
</compile_context>

<pallas_src>
import jax
import jax.numpy as jnp
import numpy as np
from jax import lax
from jax.experimental import pallas as pl
from jax.experimental.pallas import tpu as pltpu

KERNEL_SIZES = (2, 3, 4)
KMAX = max(KERNEL_SIZES)
LANES = 128


def cnn_kernel(xcol_ref, slab_ref, label_ref, logit_ref, loss_ref):
    """Fused Conv1d x3 + ReLU + max-over-time + Linear + MSE.

    xcol_ref:  (B*T, KMAX*E)  host-built im2col, lane-dense
    slab_ref:  (KMAX*E + 8 + T, 3F) packed params:
                 rows [0, KMAX*E)              conv taps (zero rows for taps >= k_j)
                 row  KMAX*E                   conv biases
                 row  KMAX*E + 1               fc weight
                 row  KMAX*E + 2, lane 0       fc bias
                 rows [KMAX*E + 8, +T)         time-validity mask (1.0 / 0.0)
    label_ref: (B, 1)
    logit_ref: (B, LANES)  lane-dense VMEM output (wrapper slices [:, :1])
    loss_ref:  (1,)        SMEM scalar output
    """
    BT, KE = xcol_ref.shape
    R, F3 = slab_ref.shape
    BIAS_ROW = KE
    FCW_ROW = KE + 1
    FCB_ROW = KE + 2
    MASK_ROW0 = KE + 8
    T = R - MASK_ROW0
    B = BT // T

    # Single MXU call for all three conv branches and all taps: K = KMAX*E = 128.
    y = jnp.dot(xcol_ref[...], slab_ref[0:KE, :],
                preferred_element_type=jnp.float32)          # (B*T, 3F)
    y = y.reshape(B, T, F3)                                  # leading-dim split only

    bias = slab_ref[BIAS_ROW:BIAS_ROW + 1, :].reshape(1, 1, F3)
    mask = slab_ref[MASK_ROW0:MASK_ROW0 + T, :].reshape(1, T, F3)

    # ReLU fused with a zero-mask on invalid time positions (t >= Tout_j).
    # Safe because T >= KMAX: every branch keeps >= 1 valid timestep and all
    # valid post-ReLU values are >= 0, so the max over time is unchanged.
    h = jnp.maximum(y + bias, 0.0) * mask                    # (B, T, 3F)

    hidden = jnp.max(h, axis=1)                              # (B, 3F)

    # Final FC: output dim 1 -> keep off the MXU (elementwise mul + lane reduce).
    fcw = slab_ref[FCW_ROW:FCW_ROW + 1, :]                   # (1, 3F)
    fcb = slab_ref[FCB_ROW, 0]
    logit = jnp.sum(hidden * fcw, axis=1, keepdims=True) + fcb   # (B, 1)

    # Lane-dense store (unmasked vst); wrapper slices back to (B, 1).
    logit_ref[...] = jnp.broadcast_to(logit, logit_ref.shape)

    diff = logit - label_ref[...]
    loss_ref[0] = jnp.mean(diff * diff)                      # scalar MSE -> SMEM


def pack_params(params, T):
    """One-time host-side packing of the 8 parameter tensors + static mask
    into a single lane-dense slab.  NOT part of the per-step jitted path."""
    E, F = params["w1"].shape[1], params["w1"].shape[2]
    F3 = len(KERNEL_SIZES) * F
    assert T >= KMAX, "masking scheme assumes T >= max kernel size"

    rows = []
    for dk in range(KMAX):
        blocks = []
        for j, k in enumerate(KERNEL_SIZES):
            w = params[f"w{j + 1}"]
            blocks.append(w[dk] if dk < k else jnp.zeros((E, F), w.dtype))
        rows.append(jnp.concatenate(blocks, axis=1))          # (E, 3F)
    wpack = jnp.concatenate(rows, axis=0)                     # (KMAX*E, 3F)

    biases = jnp.concatenate([params["b1"], params["b2"], params["b3"]], axis=1)  # (1, 3F)
    fcw = params["fcw"]                                       # (1, 3F)
    fcb_row = jnp.pad(params["fcb"], ((0, 0), (0, F3 - 1)))   # (1, 3F), fcb at [0, 0]
    pad5 = jnp.zeros((5, F3), jnp.float32)                    # align mask block to 8 sublanes

    # Time-validity mask: valid[t, j*F:(j+1)*F] = (t < T - k_j + 1), as 1.0/0.0.
    t = np.arange(T)[:, None]
    mask_np = np.concatenate(
        [np.repeat((t < (T - k + 1)).astype(np.float32), F, axis=1) for k in KERNEL_SIZES],
        axis=1)                                               # (T, 3F)
    mask = jnp.asarray(mask_np)

    slab = jnp.concatenate([wpack, biases, fcw, fcb_row, pad5, mask], axis=0)
    return slab                                               # (KMAX*E + 8 + T, 3F)


def build_xcol(x):
    """im2col along lanes, built by XLA in the jitted wrapper: one lane-dense
    (B*T, KMAX*E) slab.  Time shifts are zero-padded per batch (no wraparound)."""
    B, T, E = x.shape
    cols = [x]
    for dk in range(1, KMAX):
        cols.append(jnp.pad(x[:, dk:, :], ((0, 0), (0, dk), (0, 0))))
    return jnp.concatenate(cols, axis=-1).reshape(B * T, KMAX * E)


@jax.jit
def cnn_forward(x, slab, label):
    # Dropout in the PyTorch module has drop_rate=0.0 and is never applied in
    # forward(), so it is a no-op here.
    # TODO(synk): pad_sequence of a ragged python list has no Pallas equivalent;
    # inputs are assumed pre-padded to (B, T, E).
    B, T, _ = x.shape
    xcol = build_xcol(x)

    vmem = pl.BlockSpec(memory_space=pltpu.MemorySpace.VMEM)
    smem = pl.BlockSpec(memory_space=pltpu.MemorySpace.SMEM)

    logit_pad, loss = pl.pallas_call(
        cnn_kernel,
        out_shape=(jax.ShapeDtypeStruct((B, LANES), jnp.float32),  # lane-dense logits
                   jax.ShapeDtypeStruct((1,), jnp.float32)),       # scalar loss
        in_specs=[vmem, vmem, vmem],
        out_specs=(vmem, smem),
    )(xcol, slab, label)
    return loss[0], logit_pad[:, :1]


def ref_forward(x, params, label):
    """Pure-JAX reference matching the PyTorch forward semantics."""
    _, T, _ = x.shape
    pooled = []
    for wn, bn, k in (("w1", "b1", 2), ("w2", "b2", 3), ("w3", "b3", 4)):
        w, b = params[wn], params[bn]
        Tout = T - k + 1
        stacked = jnp.stack([x[:, dk:dk + Tout, :] for dk in range(k)], axis=2)
        conv = jnp.einsum("btke,kef->btf", stacked, w) + b.reshape(1, 1, -1)
        pooled.append(jnp.max(jnp.maximum(conv, 0.0), axis=1))
    hidden = jnp.concatenate(pooled, axis=1)
    logit = hidden @ params["fcw"].T + params["fcb"][0, 0]
    loss = jnp.mean((logit[:, 0] - label[:, 0]) ** 2)
    return loss, logit


if __name__ == "__main__":
    key = jax.random.PRNGKey(0)
    B, T, E, F = 4, 16, 32, 16   # batch, seq_len, embed_size, feature_size
    ks = jax.random.split(key, 10)

    x = jax.random.normal(ks[0], (B, T, E), jnp.float32)      # padded sequences
    label = jax.random.normal(ks[1], (B, 1), jnp.float32)

    params = {
        "w1":  0.1 * jax.random.normal(ks[2], (KERNEL_SIZES[0], E, F), jnp.float32),
        "b1":  0.1 * jax.random.normal(ks[3], (1, F), jnp.float32),
        "w2":  0.1 * jax.random.normal(ks[4], (KERNEL_SIZES[1], E, F), jnp.float32),
        "b2":  0.1 * jax.random.normal(ks[5], (1, F), jnp.float32),
        "w3":  0.1 * jax.random.normal(ks[6], (KERNEL_SIZES[2], E, F), jnp.float32),
        "b3":  0.1 * jax.random.normal(ks[7], (1, F), jnp.float32),
        "fcw": 0.1 * jax.random.normal(ks[8], (1, 3 * F), jnp.float32),
        "fcb": 0.1 * jax.random.normal(ks[9], (1, 1), jnp.float32),
    }

    # Pack once, outside the per-step jitted path (per the perf review).
    slab = jax.block_until_ready(pack_params(params, T))

    loss, logit = cnn_forward(x, slab, label)
    jax.block_until_ready((loss, logit))

    ref_loss, ref_logit = ref_forward(x, params, label)
    np.testing.assert_allclose(np.asarray(loss), np.asarray(ref_loss), rtol=1e-4, atol=1e-4)
    np.testing.assert_allclose(np.asarray(logit), np.asarray(ref_logit), rtol=1e-4, atol=1e-4)

    print("KERNEL_OK")
</pallas_src>

<mosaic_0001>
module attributes {stable_mosaic.version = 11 : i64} {
  func.func @cnn_kernel(%arg0: memref<64x128xf32, #tpu.memory_space<vmem>>, %arg1: memref<152x48xf32, #tpu.memory_space<vmem>>, %arg2: memref<4x1xf32, #tpu.memory_space<vmem>>, %arg3: memref<4x128xf32, #tpu.memory_space<vmem>>, %arg4: memref<1xf32, #tpu.memory_space<smem>>) attributes {dimension_semantics = [], scalar_prefetch = 0 : i64, scratch_operands = 0 : i64, tpu.core_type = #tpu.core_type<tc>} {
    %c0 = arith.constant 0 : index
    %c0_0 = arith.constant 0 : index
    %0 = vector.load %arg0[%c0, %c0_0] : memref<64x128xf32, #tpu.memory_space<vmem>>, vector<64x128xf32>
    %c0_1 = arith.constant 0 : index
    %c0_2 = arith.constant 0 : index
    %1 = vector.load %arg1[%c0_1, %c0_2] : memref<152x48xf32, #tpu.memory_space<vmem>>, vector<128x48xf32>
    %cst = arith.constant dense<0.000000e+00> : vector<64x48xf32>
    %2 = tpu.matmul %0, %1, %cst {dimension_numbers = #tpu.dot_dimension_numbers<[1], [0], [0], [1], [0, 0, 1, 1], [], []>} : vector<64x128xf32>, vector<128x48xf32>, vector<64x48xf32> -> vector<64x48xf32>
    %3 = vector.shape_cast %2 : vector<64x48xf32> to vector<4x16x48xf32>
    %c128 = arith.constant 128 : index
    %c0_3 = arith.constant 0 : index
    %4 = vector.load %arg1[%c128, %c0_3] : memref<152x48xf32, #tpu.memory_space<vmem>>, vector<1x48xf32>
    %5 = vector.shape_cast %4 : vector<1x48xf32> to vector<1x1x48xf32>
    %c136 = arith.constant 136 : index
    %c0_4 = arith.constant 0 : index
    %6 = vector.load %arg1[%c136, %c0_4] : memref<152x48xf32, #tpu.memory_space<vmem>>, vector<16x48xf32>
    %7 = vector.shape_cast %6 : vector<16x48xf32> to vector<1x16x48xf32>
    %8 = vector.broadcast %5 : vector<1x1x48xf32> to vector<4x16x48xf32>
    %9 = arith.addf %3, %8 : vector<4x16x48xf32>
    %cst_5 = arith.constant 0.000000e+00 : f32
    %10 = vector.broadcast %cst_5 : f32 to vector<4x16x48xf32>
    %11 = arith.maximumf %9, %10 : vector<4x16x48xf32>
    %12 = vector.broadcast %7 : vector<1x16x48xf32> to vector<4x16x48xf32>
    %13 = arith.mulf %11, %12 : vector<4x16x48xf32>
    %cst_6 = arith.constant dense<0xFF800000> : vector<4x48xf32>
    %14 = vector.multi_reduction <maximumf>, %13, %cst_6 [1] : vector<4x16x48xf32> to vector<4x48xf32>
    %c129 = arith.constant 129 : index
    %c0_7 = arith.constant 0 : index
    %15 = vector.load %arg1[%c129, %c0_7] : memref<152x48xf32, #tpu.memory_space<vmem>>, vector<1x48xf32>
    %c130 = arith.constant 130 : index
    %c0_8 = arith.constant 0 : index
    %16 = vector.load %arg1[%c130, %c0_8] : memref<152x48xf32, #tpu.memory_space<vmem>>, vector<1x1xf32>
    %17 = vector.extract %16[0, 0] : f32 from vector<1x1xf32>
    %18 = vector.broadcast %15 : vector<1x48xf32> to vector<4x48xf32>
    %19 = arith.mulf %14, %18 : vector<4x48xf32>
    %cst_9 = arith.constant dense<0.000000e+00> : vector<4xf32>
    %20 = vector.multi_reduction <add>, %19, %cst_9 [1] : vector<4x48xf32> to vector<4xf32>
    %21 = vector.shape_cast %20 : vector<4xf32> to vector<4x1xf32>
    %22 = vector.broadcast %17 : f32 to vector<4x1xf32>
    %23 = arith.addf %21, %22 : vector<4x1xf32>
    %24 = vector.shape_cast %23 : vector<4x1xf32> to vector<4x1xf32>
    %25 = vector.broadcast %24 : vector<4x1xf32> to vector<4x128xf32>
    %c0_10 = arith.constant 0 : index
    %c0_11 = arith.constant 0 : index
    %26 = vector.load %arg3[%c0_10, %c0_11] : memref<4x128xf32, #tpu.memory_space<vmem>>, vector<4x128xf32>
    tpu.vector_store %arg3[%c0_10, %c0_11], %25 {strides = array<i32>} : memref<4x128xf32, #tpu.memory_space<vmem>>, vector<4x128xf32>,
    %c0_12 = arith.constant 0 : index
    %c0_13 = arith.constant 0 : index
    %27 = vector.load %arg2[%c0_12, %c0_13] : memref<4x1xf32, #tpu.memory_space<vmem>>, vector<4x1xf32>
    %28 = arith.subf %23, %27 : vector<4x1xf32>
    %29 = arith.mulf %28, %28 : vector<4x1xf32>
    %30 = vector.shape_cast %29 : vector<4x1xf32> to vector<1x4x1xf32>
    %cst_14 = arith.constant dense<0.000000e+00> : vector<1xf32>
    %31 = vector.multi_reduction <add>, %30, %cst_14 [1, 2] : vector<1x4x1xf32> to vector<1xf32>
    %32 = vector.shape_cast %31 : vector<1xf32> to vector<1x1x1xf32>
    %33 = vector.extract %32[0, 0, 0] : f32 from vector<1x1x1xf32>
    %cst_15 = arith.constant 4.000000e+00 : f32
    %34 = arith.divf %33, %cst_15 : f32
    %c0_16 = arith.constant 0 : index
    %35 = memref.load %arg4[%c0_16] : memref<1xf32, #tpu.memory_space<smem>>
    memref.store %34, %arg4[%c0_16] : memref<1xf32, #tpu.memory_space<smem>>
    return
  }
}

</mosaic_0001>

<bundles_post_ra>
// kernel: cnn_forward.1
= control target key start
LH: loop header
LB: loop body
LE: loop exit
PB: predicated region body
PF: predicated region fallthrough
CT: control target
= control target key end

     0   :  { %s425_s0 = inlined_call_operand.vmem [shape: f32[64,128], index: 0, kind: input, shape index: {}]   ;;  %s426_s1 = inlined_call_operand.vmem [shape: f32[152,48], index: 1, kind: input, shape index: {}]   ;;  %s427_s2 = inlined_call_operand.vmem [shape: f32[4,1], index: 2, kind: input, shape index: {}]   ;;  %s428_s3 = inlined_call_operand.vmem [shape: f32[4,128], index: 3, kind: output, shape index: {0}]   ;;  %s429_s4 = inlined_call_operand.hbm [shape: f32[1], index: 4, kind: output, shape index: {1}]  }
   0x1   :  { %v40_v0 = vld [vmem:[%s426_s1 + $0x78] sm:$0xff]  ;;  %v39_v1 = vld [vmem:[%s426_s1 + $0x70] sm:$0xff]  ;;  %v38_v2 = vld [vmem:[%s426_s1 + $0x68] sm:$0xff] }
   0x2   :  { %41 = vmatpush.msra.mxu0 %v40_v0  ;;  %220 = vmatpush.msra.mxu1 %v40_v0  ;;  %v37_v3 = vld [vmem:[%s426_s1 + $0x60] sm:$0xff]  ;;  %v36_v4 = vld [vmem:[%s426_s1 + $0x58] sm:$0xff] }
   0x3   :  { %221 = vmatpush.msra.mxu2 %v40_v0  ;;  %222 = vmatpush.msra.mxu3 %v40_v0 }
   0x4   :  { %42 = vmatpush.msra.mxu0 %v39_v1  ;;  %223 = vmatpush.msra.mxu1 %v39_v1 }
   0x5   :  { %224 = vmatpush.msra.mxu2 %v39_v1  ;;  %225 = vmatpush.msra.mxu3 %v39_v1 }
   0x6   :  { %43 = vmatpush.msra.mxu0 %v38_v2  ;;  %226 = vmatpush.msra.mxu1 %v38_v2 }
   0x7   :  { %227 = vmatpush.msra.mxu2 %v38_v2  ;;  %228 = vmatpush.msra.mxu3 %v38_v2 }
   0x8   :  { %44 = vmatpush.msra.mxu0 %v37_v3  ;;  %229 = vmatpush.msra.mxu1 %v37_v3 }
   0x9   :  { %10 = vsyncpa [#allocation3], 0  ;;  %230 = vmatpush.msra.mxu2 %v37_v3  ;;  %231 = vmatpush.msra.mxu3 %v37_v3  ;;  %v35_v5 = vld [vmem:[%s426_s1 + $0x50] sm:$0xff]  ;;  %v34_v6 = vld [vmem:[%s426_s1 + $0x48] sm:$0xff]  ;;  %vm110_vm0 = vcmask 392192   ;;  %vm160_vm1 = vcmask 1041409  }
   0xa   :  { %45 = vmatpush.msra.mxu0 %v36_v4  ;;  %232 = vmatpush.msra.mxu1 %v36_v4  ;;  %v33_v7 = vld [vmem:[%s426_s1 + $0x40] sm:$0xff]  ;;  %v32_v8 = vld [vmem:[%s426_s1 + $0x38] sm:$0xff]  ;;  %v31_v9 = vld [vmem:[%s426_s1 + $0x30] sm:$0xff]  ;;  %vm163_vm2 = vcmask 1042434   ;;  %vm166_vm3 = vcmask 1043459   ;;  %vm169_vm4 = vcmask 388096  }
   0xb   :  { %233 = vmatpush.msra.mxu2 %v36_v4  ;;  %234 = vmatpush.msra.mxu3 %v36_v4  ;;  %v30_v10 = vld [vmem:[%s426_s1 + $0x28] sm:$0xff]  ;;  %v29_v11 = vld [vmem:[%s426_s1 + $0x20] sm:$0xff]  ;;  %v28_v12 = vld [vmem:[%s426_s1 + $0x18] sm:$0xff]  ;;  %vm179_vm5 = vcmask 3072   ;;  %s208_s24 = sshll.u32 %s429_s4, 4  ;;  %s295_s28 = smov [#allocation2]   ;;  %s209_s24 = int_to_ptr.hbm [resolvable:$true] %s208_s24 }
   0xc   :  { %46 = vmatpush.msra.mxu0 %v35_v5  ;;  %235 = vmatpush.msra.mxu1 %v35_v5  ;;  %v27_v13 = vld [vmem:[%s426_s1 + $0x10] sm:$0xff]  ;;  %v26_v14 = vld [vmem:[%s426_s1 + $0x8] sm:$0xff]  ;;  %v25_v15 = vld [vmem:[%s426_s1] sm:$0xff] }
   0xd   :  { %236 = vmatpush.msra.mxu2 %v35_v5  ;;  %237 = vmatpush.msra.mxu3 %v35_v5  ;;  %v17_v16 = vld [vmem:[%s425_s0] sm:$0xff]  ;;  %v19_v17 = vld [vmem:[%s425_s0 + $0x10] sm:$0xff]  ;;  %v18_v20 = vld [vmem:[%s425_s0 + $0x8] sm:$0xff] }
   0xe   :  { %47 = vmatpush.msra.mxu0 %v34_v6  ;;  %238 = vmatpush.msra.mxu1 %v34_v6  ;;  %v21_v18 = vld [vmem:[%s425_s0 + $0x20] sm:$0xff]  ;;  %v23_v19 = vld [vmem:[%s425_s0 + $0x30] sm:$0xff]  ;;  %v20_v21 = vld [vmem:[%s425_s0 + $0x18] sm:$0xff] }
   0xf   :  { %239 = vmatpush.msra.mxu2 %v34_v6  ;;  %240 = vmatpush.msra.mxu3 %v34_v6  ;;  %v22_v22 = vld [vmem:[%s425_s0 + $0x28] sm:$0xff]  ;;  %v24_v23 = vld [vmem:[%s425_s0 + $0x38] sm:$0xff]  ;;  %v276_v24 = vld [vmem:[%s426_s1 + $0x80] ss:$0 sm:$0xff] }
  0x10   :  { %48 = vmatpush.msra.mxu0 %v33_v7  ;;  %241 = vmatpush.msra.mxu1 %v33_v7  ;;  %v83_v30 = vld [vmem:[%s426_s1 + $0x88] sm:$0xff]  ;;  %v84_v41 = vld [vmem:[%s426_s1 + $0x90] sm:$0xff]  ;;  %v148_v46 = vld [vmem:[%s426_s1 + $0x82] sm:$0x1] }
  0x11   :  { %242 = vmatpush.msra.mxu2 %v33_v7  ;;  %243 = vmatpush.msra.mxu3 %v33_v7  ;;  %268 = vpush %v148_v46 }
  0x12   :  { %49 = vmatpush.msra.mxu0 %v32_v8  ;;  %244 = vmatpush.msra.mxu1 %v32_v8 }
  0x13   :  { %245 = vmatpush.msra.mxu2 %v32_v8  ;;  %246 = vmatpush.msra.mxu3 %v32_v8 }
  0x14   :  { %50 = vmatpush.msra.mxu0 %v31_v9  ;;  %247 = vmatpush.msra.mxu1 %v31_v9 }
  0x15   :  { %248 = vmatpush.msra.mxu2 %v31_v9  ;;  %249 = vmatpush.msra.mxu3 %v31_v9 }
  0x16   :  { %51 = vmatpush.msra.mxu0 %v30_v10  ;;  %250 = vmatpush.msra.mxu1 %v30_v10 }
  0x17   :  { %251 = vmatpush.msra.mxu2 %v30_v10  ;;  %252 = vmatpush.msra.mxu3 %v30_v10 }
  0x18   :  { %52 = vmatpush.msra.mxu0 %v29_v11  ;;  %253 = vmatpush.msra.mxu1 %v29_v11 }
  0x19   :  { %254 = vmatpush.msra.mxu2 %v29_v11  ;;  %255 = vmatpush.msra.mxu3 %v29_v11 }
  0x1a   :  { %53 = vmatpush.msra.mxu0 %v28_v12  ;;  %256 = vmatpush.msra.mxu1 %v28_v12 }
  0x1b   :  { %257 = vmatpush.msra.mxu2 %v28_v12  ;;  %258 = vmatpush.msra.mxu3 %v28_v12 }
  0x1c   :  { %54 = vmatpush.msra.mxu0 %v27_v13  ;;  %259 = vmatpush.msra.mxu1 %v27_v13 }
  0x1d   :  { %260 = vmatpush.msra.mxu2 %v27_v13  ;;  %261 = vmatpush.msra.mxu3 %v27_v13 }
  0x1e   :  { %55 = vmatpush.msra.mxu0 %v26_v14  ;;  %262 = vmatpush.msra.mxu1 %v26_v14 }
  0x1f   :  { %263 = vmatpush.msra.mxu2 %v26_v14  ;;  %264 = vmatpush.msra.mxu3 %v26_v14 }
  0x20   :  { %56 = vmatpush.msra.mxu0 %v25_v15  ;;  %265 = vmatpush.msra.mxu1 %v25_v15 }
  0x21   :  { %266 = vmatpush.msra.mxu2 %v25_v15  ;;  %267 = vmatpush.msra.mxu3 %v25_v15 }
  0x22   :  { %57 = vmatmul.f32.vlgmr.msra.gmra.mxu0 %v17_v16  ;;  %63 = vmatmul.f32.vlgmr.msra.gmra.mxu1 %v19_v17 }
  0x23   :  { %69 = vmatmul.f32.vlgmr.msra.gmra.mxu2 %v21_v18  ;;  %75 = vmatmul.f32.vlgmr.msra.gmra.mxu3 %v23_v19 }
  0x2a   :  { %60 = vmatmul.f32.gmra.mxu0 %v18_v20  ;;  %66 = vmatmul.f32.gmra.mxu1 %v20_v21 }
  0x2b   :  { %72 = vmatmul.f32.gmra.mxu2 %v22_v22  ;;  %78 = vmatmul.f32.gmra.mxu3 %v24_v23  ;;  %v277_v22 = vld [vmem:[%s426_s1 + $0x81] ss:$0 sm:$0xff] }
  0x42   :  { %s269_s1 = spop %268 }
  0x9f   :  { %v58_v25 = vpop.f32.mrf.mxu0  ;;  %v64_v26 = vpop.f32.mrf.mxu1 }
  0xa0   :  { %v86_v27 = vadd.f32 %v276_v24, %v58_v25  ;;  %v88_v28 = vadd.f32 %v276_v24, %v64_v26 }
  0xa2   :  { %v94_v29 = vmax.f32 %v86_v27, 0.0  ;;  %v96_v31 = vmax.f32 %v88_v28, 0.0 }
  0xa4   :  { %v102_v34 = vmul.f32 %v94_v29, %v83_v30  ;;  %v104_v42 = vmul.f32 %v96_v31, %v83_v30 }
  0xa6   :  { %v70_v32 = vpop.f32.mrf.mxu2  ;;  %v76_v33 = vpop.f32.mrf.mxu3  ;;  %v111_v45 = vsel %vm110_vm0, %v102_v34, -inf  ;;  %v120_v51 = vsel %vm110_vm0, %v104_v42, -inf }
  0xa7   :  { %v61_v35 = vpop.f32.mrf.mxu0  ;;  %v67_v36 = vpop.f32.mrf.mxu1  ;;  %v90_v37 = vadd.f32 %v276_v24, %v70_v32  ;;  %v92_v38 = vadd.f32 %v276_v24, %v76_v33 }
  0xa8   :  { %v87_v39 = vadd.f32 %v276_v24, %v61_v35  ;;  %v89_v40 = vadd.f32 %v276_v24, %v67_v36 }
  0xa9   :  { %v98_v47 = vmax.f32 %v90_v37, 0.0  ;;  %v100_v48 = vmax.f32 %v92_v38, 0.0 }
  0xaa   :  { %v95_v43 = vmax.f32 %v87_v39, 0.0  ;;  %v97_v44 = vmax.f32 %v89_v40, 0.0 }
  0xab   :  { %v106_v60 = vmul.f32 %v98_v47, %v83_v30  ;;  %v108_v61 = vmul.f32 %v100_v48, %v83_v30 }
  0xac   :  { %v103_v49 = vmul.f32 %v95_v43, %v84_v41  ;;  %v105_v50 = vmul.f32 %v97_v44, %v84_v41  ;;  %v173_v44 = vstv %s269_s1 }
  0xad   :  { %v129_v6 = vsel %vm110_vm0, %v106_v60, -inf  ;;  %v138_v7 = vsel %vm110_vm0, %v108_v61, -inf }
  0xae   :  { %v112_v52 = vsel %vm110_vm0, %v103_v49, -inf  ;;  %v121_v53 = vsel %vm110_vm0, %v105_v50, -inf  ;;  %v73_v54 = vpop.f32.mrf.mxu2  ;;  %v79_v55 = vpop.f32.mrf.mxu3 }
  0xaf   :  { %v113_v56 = vmax.f32 %v111_v45, %v112_v52  ;;  %v122_v57 = vmax.f32 %v120_v51, %v121_v53  ;;  %v91_v58 = vadd.f32 %v276_v24, %v73_v54  ;;  %v93_v59 = vadd.f32 %v276_v24, %v79_v55  ;;  %v176_v45 = vld [vmem:[%s427_s2] sm:$0xf] }
  0xb0   :  { %v294_v51 = vmov 4.0  }
  0xb1   :  { %v114_v62 = vrot.slane %v113_v56, 4  ;;  %v123_v63 = vrot.slane %v122_v57, 4  ;;  %v99_v0 = vmax.f32 %v91_v58, 0.0  ;;  %v101_v1 = vmax.f32 %v93_v59, 0.0 }
  0xb2   :  { %278 = vrcp.f32 %v294_v51 }
  0xb3   :  { %v115_v2 = vmax.f32 %v113_v56, %v114_v62  ;;  %v124_v3 = vmax.f32 %v122_v57, %v123_v63  ;;  %v107_v4 = vmul.f32 %v99_v0, %v84_v41  ;;  %v109_v5 = vmul.f32 %v101_v1, %v84_v41 }
  0xb5   :  { %v116_v8 = vrot.slane %v115_v2, 2  ;;  %v125_v9 = vrot.slane %v124_v3, 2  ;;  %v130_v10 = vsel %vm110_vm0, %v107_v4, -inf  ;;  %v139_v11 = vsel %vm110_vm0, %v109_v5, -inf }
  0xb6   :  { %v131_v12 = vmax.f32 %v129_v6, %v130_v10  ;;  %v140_v13 = vmax.f32 %v138_v7, %v139_v11 }
  0xb7   :  { %v126_v14 = vmax.f32 %v124_v3, %v125_v9  ;;  %v117_v17 = vmax.f32 %v115_v2, %v116_v8 }
  0xb8   :  { %v132_v15 = vrot.slane %v131_v12, 4  ;;  %v141_v16 = vrot.slane %v140_v13, 4  ;;  %v279_v52 = vpop.eup %278 }
  0xb9   :  { %v127_v18 = vrot.slane %v126_v14, 1  ;;  %v118_v25 = vrot.slane %v117_v17, 1  ;;  %v191_v53 = vmul.f32 4.0, %v279_v52  ;;  %vm195_vm6 = vweird.f32 %v279_v52 }
  0xba   :  { %v133_v19 = vmax.f32 %v131_v12, %v132_v15  ;;  %v142_v20 = vmax.f32 %v140_v13, %v141_v16 }
  0xbb   :  { %v128_v21 = vmax.f32 %v126_v14, %v127_v18  ;;  %v119_v31 = vmax.f32 %v117_v17, %v118_v25  ;;  %v192_v54 = vsub.f32 1.0, %v191_v53 }
  0xbc   :  { %v134_v23 = vrot.slane %v133_v19, 2  ;;  %v143_v24 = vrot.slane %v142_v20, 2 }
  0xbd   :  { %v152_v28 = vmul.f32 %v277_v22, %v128_v21  ;;  %v151_v37 = vmul.f32 %v277_v22, %v119_v31  ;;  %v193_v58 = vmul.f32 %v279_v52, %v192_v54 }
  0xbe   :  { %v135_v26 = vmax.f32 %v133_v19, %v134_v23  ;;  %v144_v27 = vmax.f32 %v142_v20, %v143_v24 }
  0xbf   :  { %v159_v34 = vrot.slane %v152_v28, 7  ;;  %v194_v61 = vadd.f32 %v279_v52, %v193_v58 }
  0xc0   :  { %v136_v29 = vrot.slane %v135_v26, 1  ;;  %v145_v30 = vrot.slane %v144_v27, 1 }
  0xc1   :  { %v161_v40 = vsel %vm160_vm1, %v159_v34, %v151_v37  ;;  %v196_v0 = vsel %vm195_vm6, %v279_v52, %v194_v61 }
  0xc2   :  { %v137_v32 = vmax.f32 %v135_v26, %v136_v29  ;;  %v146_v33 = vmax.f32 %v144_v27, %v145_v30 }
  0xc4   :  { %v153_v35 = vmul.f32 %v277_v22, %v137_v32  ;;  %v154_v36 = vmul.f32 %v277_v22, %v146_v33 }
  0xc6   :  { %v162_v38 = vrot.slane %v153_v35, 6  ;;  %v165_v39 = vrot.slane %v154_v36, 5 }
  0xc8   :  { %v164_v41 = vsel %vm163_vm2, %v162_v38, %v161_v40 }
  0xc9   :  { %v167_v42 = vsel %vm166_vm3, %v165_v39, %v164_v41 }
  0xca   :  { %v170_v43 = vsel %vm169_vm4, %v167_v42, 0.0 }
  0xcb   :  { %171 = vadd.xlane.f32.xlu0 %v170_v43 }
 0x13e   :  { %v172_v46 = vpop.xlane.xlu0 %171 }
 0x13f   :  { %v174_v47 = vadd.f32 %v173_v44, %v172_v46 }
 0x141   :  { %175 = vst [vmem:[%s428_s3] sm:$0xf] %v174_v47  ;;  %v177_v48 = vsub.f32 %v174_v47, %v176_v45 }
 0x143   :  { %v178_v49 = vmul.f32 %v177_v48, %v177_v48 }
 0x145   :  { %v180_v50 = vsel %vm179_vm5, %v178_v49, 0.0 }
 0x146   :  { %181 = vadd.xlane.f32.xlu0 %v180_v50 }
 0x1b9   :  { %v182_v55 = vpop.xlane.xlu0 %181 }
 0x1ba   :  { %v183_v56 = vrot.slane %v182_v55, 4 }
 0x1bc   :  { %v184_v57 = vadd.f32 %v183_v56, %v182_v55 }
 0x1be   :  { %v185_v59 = vrot.slane %v184_v57, 2 }
 0x1c0   :  { %v186_v60 = vadd.f32 %v185_v59, %v184_v57 }
 0x1c2   :  { %v187_v62 = vrot.slane %v186_v60, 1 }
 0x1c4   :  { %v188_v63 = vadd.f32 %v187_v62, %v186_v60 }
 0x1c6   :  { %270 = vpush %v188_v63 }
 0x1c7   :  { %272 = vpush %v196_v0 }
 0x1f7   :  { %s271_s25 = spop %270 }
 0x1f8   :  { %s273_s26 = spop %272 }
 0x1f9   :  { %s198_s27 = smul.f32 %s273_s26, %s271_s25 }
 0x1fb   :  { %200 = sst [smem:[#allocation2]] %s198_s27 }
 0x1fc   :  { %211 = dma.smem_to_hbm %s295_s28, 16, %s209_s24, [#allocation3]  }
 0x1fd   :  { %292 = dma.done.wait [#allocation3], 16  }
 0x1fe   :  { %293 = vsyncadd [#allocation3], 4294967280 }
 0x1ff   :  { %218 = sfence }
 0x200   :  { %219 = vsyncpa [#allocation3], 1 }

</bundles_post_ra>
